<compile_context>
chip_gen: v7x
topology: tpu7x:2x2x1
jax: 0.10.0
libtpu: 0.0.40
codegen_flags: <defaults>
</compile_context>

<pallas_src>
import functools
import math

import jax
import jax.numpy as jnp
from jax.experimental import pallas as pl
from jax.experimental.pallas import tpu as pltpu

_LANES = 128
_SOFTPLUS_THRESHOLD = 20.0  # same stability threshold as torch.nn.functional.softplus


def _inv_softplus(bias: float) -> float:
    """Scalar equivalent of torchrl's inv_softplus: log(clamp_min(expm1(bias), 1e-6))."""
    return math.log(max(math.expm1(float(bias)), 1e-6))


def _biased_softplus_kernel(x_ref, o_ref, *, shift, min_val, threshold):
    # softplus with PyTorch's stability trick, computed in f32:
    #   softplus(z) = z               if z > threshold
    #               = log1p(exp(z))   otherwise
    # NOTE(v7x bf16): 2 transcendentals/elem (exp + log1p).  If a bundle dump shows the EUP
    # (not HBM) saturating on v7x, the lever is a one-transcendental approximation; on
    # v5e/v6e the single EUP comfortably outruns the HBM demand, so leave as is.
    z = x_ref[...].astype(jnp.float32) + shift
    safe_z = jnp.minimum(z, threshold)  # keep the unused branch overflow-free
    sp = jnp.where(z > threshold, z, jnp.log1p(jnp.exp(safe_z)))
    o_ref[...] = (sp + min_val).astype(o_ref.dtype)


def _sublanes_for(dtype) -> int:
    itemsize = jnp.dtype(dtype).itemsize
    if itemsize >= 4:
        return 8
    if itemsize == 2:
        return 16
    return 32


def _tile_target_bytes():
    """Per-generation (tile_bytes, vmem_limit_bytes_or_None), chosen at trace time."""
    try:
        info = pltpu.get_tpu_info()
        name = str(getattr(info, "chip_version", "")).lower()
        if "v5" in name:
            # v5e: ~0.8 TB/s HBM, 16 MiB default scoped VMEM -> 2 MiB tiles
            # (double-buffered in+out = 8 MiB) need no limit override.
            return 2 << 20, None
        if "v6" in name:
            # v6e: ~1.4 TB/s -> 4 MiB tiles; in+out double-buffered = 16 MiB.
            return 4 << 20, 32 << 20
        # v7x & newer: ~3.2 TB/s HBM, 64 MiB physical VMEM -> 6 MiB tiles
        # (in+out double-buffered = 24 MiB); raise scoped VMEM to 32 MiB.
        return 6 << 20, 32 << 20
    except Exception:
        # Unknown chip / interpret mode: conservative default that fits every
        # generation's default scoped-VMEM limit.
        return 2 << 20, None


def _run_tiles(x2d, out_dtype, shift, min_val):
    """Run the kernel over a (rows, 128) slab; rows must be a multiple of the
    storage dtype's sublane count."""
    rows, lanes = x2d.shape
    assert lanes == _LANES
    sublanes = _sublanes_for(x2d.dtype)
    itemsize = jnp.dtype(x2d.dtype).itemsize
    target_bytes, vmem_limit = _tile_target_bytes()

    target_rows = max(
        sublanes, (target_bytes // (_LANES * itemsize)) // sublanes * sublanes
    )

    # Guarantee >= 2 grid blocks whenever the slab spans more than one native tile,
    # so the "parallel" axis can be sharded across v7x's two TensorCores.
    n_tiles = rows // sublanes
    if n_tiles >= 2:
        half_rows = pl.cdiv(n_tiles, 2) * sublanes
        row_block = min(target_rows, half_rows)
    else:
        row_block = rows
    num_blocks = pl.cdiv(rows, row_block)  # Pallas masks the partial last block

    kernel = functools.partial(
        _biased_softplus_kernel,
        shift=float(shift),
        min_val=float(min_val),
        threshold=_SOFTPLUS_THRESHOLD,
    )

    compiler_kwargs = dict(dimension_semantics=("parallel",))
    if vmem_limit is not None:
        compiler_kwargs["vmem_limit_bytes"] = int(vmem_limit)

    return pl.pallas_call(
        kernel,
        out_shape=jax.ShapeDtypeStruct((rows, _LANES), out_dtype),
        grid_spec=pltpu.PrefetchScalarGridSpec(
            num_scalar_prefetch=0,
            grid=(num_blocks,),
            in_specs=[pl.BlockSpec((row_block, _LANES), lambda i: (i, 0))],
            out_specs=pl.BlockSpec((row_block, _LANES), lambda i: (i, 0)),
        ),
        compiler_params=pltpu.CompilerParams(**compiler_kwargs),
    )(x2d)


def _plain_biased_softplus(x_flat, shift, min_val, out_dtype):
    """Plain-jnp path for the < one-chunk ragged tail (same math as the kernel)."""
    z = x_flat.astype(jnp.float32) + shift
    safe_z = jnp.minimum(z, _SOFTPLUS_THRESHOLD)
    sp = jnp.where(z > _SOFTPLUS_THRESHOLD, z, jnp.log1p(jnp.exp(safe_z)))
    return (sp + min_val).astype(out_dtype)


def biased_softplus(x, bias: float = 1.0, min_val: float = 0.01):
    """y = softplus(x + inv_softplus(bias - min_val)) + min_val via a Pallas TPU kernel."""
    shift = _inv_softplus(bias - min_val)
    orig_shape = x.shape
    dtype = x.dtype

    flat = x.reshape(-1)
    n = flat.shape[0]
    if n == 0:
        return x

    sublanes = _sublanes_for(dtype)
    chunk = sublanes * _LANES

    if n % chunk == 0:
        # Fast path (common NN-activation case): single read + single write.
        y2d = _run_tiles(flat.reshape(n // _LANES, _LANES), dtype, shift, min_val)
        return y2d.reshape(orig_shape)

    n_main = (n // chunk) * chunk
    if n_main == 0:
        # Tiny input (< one (sublanes,128) tile): one padded tile, negligible traffic.
        padded = jnp.pad(flat, (0, chunk - n))
        y2d = _run_tiles(padded.reshape(sublanes, _LANES), dtype, shift, min_val)
        return y2d.reshape(-1)[:n].reshape(orig_shape)

    # Ragged: kernel on the chunk-aligned prefix, plain jnp on the < chunk tail.
    # Avoids the whole-array pad + output-slice passes of the naive approach.
    head = _run_tiles(
        flat[:n_main].reshape(n_main // _LANES, _LANES), dtype, shift, min_val
    ).reshape(-1)
    tail = _plain_biased_softplus(flat[n_main:], shift, min_val, dtype)
    return jnp.concatenate([head, tail]).reshape(orig_shape)


def _reference(x, bias: float = 1.0, min_val: float = 0.01):
    shift = _inv_softplus(bias - min_val)
    xf = x.astype(jnp.float32)
    return (jax.nn.softplus(xf + shift) + min_val).astype(x.dtype)


if __name__ == "__main__":
    # 1) f32 NCHW-style activation tensor (fast path; >=2-block "parallel" grid).
    x = jax.random.normal(jax.random.PRNGKey(0), (2, 4, 16, 16), dtype=jnp.float32) * 3.0
    y = jax.block_until_ready(biased_softplus(x, bias=1.0, min_val=0.01))
    y_ref = _reference(x, bias=1.0, min_val=0.01)
    assert y.shape == x.shape and y.dtype == x.dtype
    assert jnp.allclose(y, y_ref, atol=1e-5, rtol=1e-5), "f32 mismatch vs reference"

    # 2) Tiny ragged shape (< one tile: single padded-tile path).
    x_r = jax.random.normal(jax.random.PRNGKey(1), (3, 5, 7), dtype=jnp.float32) * 3.0
    y_r = jax.block_until_ready(biased_softplus(x_r, bias=1.0, min_val=0.01))
    assert jnp.allclose(y_r, _reference(x_r), atol=1e-5, rtol=1e-5), "tiny ragged mismatch"

    # 3) Ragged shape larger than one chunk (prefix-kernel + jnp-tail path).
    x_p = jax.random.normal(jax.random.PRNGKey(3), (2, 4, 16, 17), dtype=jnp.float32) * 3.0
    y_p = jax.block_until_ready(biased_softplus(x_p, bias=1.0, min_val=0.01))
    assert jnp.allclose(y_p, _reference(x_p), atol=1e-5, rtol=1e-5), "prefix/tail mismatch"

    # 4) bf16 I/O (f32 compute inside the kernel; allow ~1 bf16 ulp of cast difference).
    x_b = (jax.random.normal(jax.random.PRNGKey(2), (2, 4, 16, 16)) * 3.0).astype(jnp.bfloat16)
    y_b = jax.block_until_ready(biased_softplus(x_b, bias=1.0, min_val=0.01))
    ref_b = _reference(x_b).astype(jnp.float32)
    err = jnp.abs(y_b.astype(jnp.float32) - ref_b)
    assert y_b.dtype == jnp.bfloat16, "bf16 dtype mismatch"
    assert bool(jnp.all(err <= 1e-3 + 1e-2 * jnp.abs(ref_b))), "bf16 mismatch vs reference"

    print("KERNEL_OK")
</pallas_src>

<mosaic_0001>
module attributes {stable_mosaic.version = 11 : i64} {
  func.func @_biased_softplus_kernel(%arg0: i32, %arg1: memref<8x128xf32, #tpu.memory_space<vmem>>, %arg2: memref<8x128xf32, #tpu.memory_space<vmem>>) attributes {dimension_semantics = [#tpu.dimension_semantics<parallel>], iteration_bounds = array<i64: 2>, scalar_prefetch = 0 : i64, scratch_operands = 0 : i64, tpu.core_type = #tpu.core_type<tc>, window_params = [{transform_indices = @transform_0, window_bounds = array<i64: 8, 128>}, {transform_indices = @transform_1, window_bounds = array<i64: 8, 128>}]} {
    %c0 = arith.constant 0 : index
    %c0_0 = arith.constant 0 : index
    %0 = vector.load %arg1[%c0, %c0_0] : memref<8x128xf32, #tpu.memory_space<vmem>>, vector<8x128xf32>
    %cst = arith.constant 0.525458694 : f32
    %1 = vector.broadcast %cst : f32 to vector<8x128xf32>
    %2 = arith.addf %0, %1 : vector<8x128xf32>
    %cst_1 = arith.constant 2.000000e+01 : f32
    %3 = vector.broadcast %cst_1 : f32 to vector<8x128xf32>
    %4 = arith.minimumf %2, %3 : vector<8x128xf32>
    %cst_2 = arith.constant 2.000000e+01 : f32
    %5 = vector.broadcast %cst_2 : f32 to vector<8x128xf32>
    %6 = arith.cmpf ogt, %2, %5 : vector<8x128xf32>
    %7 = math.exp %4 : vector<8x128xf32>
    %8 = math.log1p %7 : vector<8x128xf32>
    %9 = arith.select %6, %2, %8 : vector<8x128xi1>, vector<8x128xf32>
    %cst_3 = arith.constant 0.00999999977 : f32
    %10 = vector.broadcast %cst_3 : f32 to vector<8x128xf32>
    %11 = arith.addf %9, %10 : vector<8x128xf32>
    %c0_4 = arith.constant 0 : index
    %c0_5 = arith.constant 0 : index
    %12 = vector.load %arg2[%c0_4, %c0_5] : memref<8x128xf32, #tpu.memory_space<vmem>>, vector<8x128xf32>
    tpu.vector_store %arg2[%c0_4, %c0_5], %11 {strides = array<i32>} : memref<8x128xf32, #tpu.memory_space<vmem>>, vector<8x128xf32>,
    return
  }
  func.func @transform_0(%arg0: i32) -> (i32, i32) {
    %c0_i32 = arith.constant 0 : i32
    %c0_i32_0 = arith.constant 0 : i32
    return %arg0, %c0_i32 : i32, i32
  }
  func.func @transform_1(%arg0: i32) -> (i32, i32) {
    %c0_i32 = arith.constant 0 : i32
    %c0_i32_0 = arith.constant 0 : i32
    return %arg0, %c0_i32 : i32, i32
  }
}

</mosaic_0001>

<bundles_post_ra>
// kernel: tpu_custom_call.1
= control target key start
LH: loop header
LB: loop body
LE: loop exit
PB: predicated region body
PF: predicated region fallthrough
CT: control target
= control target key end

     0   :  { %6 = vsyncpa [#allocation3], 0  ;;  %s567_s0 = inlined_call_operand.hbm [shape: f32[16,128], index: 0, kind: input, shape index: {}]   ;;  %s568_s1 = inlined_call_operand.hbm [shape: f32[16,128], index: 1, kind: output, shape index: {}]  }
   0x1   :  { %8 = vsyncpa [#allocation3 + $0x1], 0 }
   0x2   :  { %9 = vsyncpa [#allocation4], 0 }
   0x3   :  { %11 = vsyncpa [#allocation4 + $0x1], 0  ;;  %s406_s6 = smov 0   ;;  %s408_s7 = smov 0  }
   0x4   :  { %s410_s8 = smov 0   ;;  %s412_s9 = smov 0  }
   0x5 LB: > { %s427_s10 = sadd.s32 4294967295, %s392_s9   ;;  %s234_s11 = sadd.s32 4294967294, %s392_s9   ;;  %s392_s9 = sphi %s412_s9, %s583_s9   ;;  %s388_s8 = sphi %s410_s8, %s582_s8   ;;  %s384_s7 = sphi %s408_s7, %s581_s7   ;;  %s380_s6 = sphi %s406_s6, %s580_s6  }
   0x6   : > { %s431_s12 = sadd.s32 1, %s392_s9   ;;  %s24_s13 = sadd.s32 1, %s388_s8 }
   0x7   : > { %s21_s14 = ssub.s32 %s392_s9, %s431_s12  ;;  %p31_p0 = scmp.ne.s32.totalorder %s388_s8, %s384_s7 }
   0x8   : > { %p22_p1 = scmp.eq.s32.totalorder %s21_s14, 0  ;;  %p32_p2 = scmp.eq.s32.totalorder %s392_s9, 0 }
   0x9   : > { %p37_p3 = scmp.ne.s32.totalorder %s384_s7, %s380_s6  ;;  %p38_p4 = scmp.eq.s32.totalorder %s427_s10, 0 }
   0xa   : > { %s443_s15 = scalar_select %p22_p1, %s388_s8, %s24_s13  }
   0xb   : > { %p445_p5 = por %p32_p2, %p31_p0  ;;  %p449_p6 = por %p38_p4, %p37_p3 }
   0xc   : > { %p61_p7 = scmp.eq.s32.totalorder %s427_s10, 1  ;;  %p67_p8 = scmp.eq.s32.totalorder %s234_s11, 1 }
   0xd   : > { %p258_p10 = scmp.lt.s32.totalorder %s392_s9, 2  ;;  %s87_s20 = sand.u32 1, %s388_s8  }
   0xe   : > { %p456_p11 = por %p61_p7, %p31_p0  ;;  %p460_p12 = por %p67_p8, %p37_p3 }
   0xf   : > { %s238_s21 = sshll.u32 %s392_s9, 7  ;;  %s237_s22 = sshll.u32 %s87_s20, 3 }
  0x10   : > { %s572_s18 = scalar_select %p456_p11, 1, 0 }
  0x11   : > { %s573_s19 = scalar_select %p460_p12, 1, 0 }
  0x12   : > { %s469_s25 = scalar_lea.hbm %s567_s0, %s238_s21  ;;  %s91_s26 = scalar_lea.vmem [#allocation2], %s237_s22 }
  0x13   : > { %s98_s27 = sshll.u32 %s91_s26, 4  ;;  %p473_p13 = pnand %p258_p10, %p445_p5  ;;  %s477_s27 = int_to_ptr.vmem [resolvable:$true] %s98_s27 }
  0x14   : > { %s88_s29 = scalar_lea.sflag [#allocation3], %s87_s20  ;;  %s296_s30 = scalar_lea.hbm %s469_s25, 128 }
  0x15   : > { %p297_p2 = scmp.ne.s32.totalorder %s469_s25, %s296_s30  ;;  %p298_p3 = pneg %p473_p13 }
  0x16   : > { %s301_s4 = scalar_lea.hbm %s567_s0, 256  ;;  %p302_p5 = scmp.lt.u32.totalorder %s469_s25, %s567_s0 }
  0x17   : > { %p299_p4 = pnand %p298_p3, %p297_p2  ;;  %p303_p8 = scmp.lt.u32.totalorder %s301_s4, %s296_s30 }
  0x18   : > { %p305_p9 = scmp.lt.u32.totalorder %s296_s30, %s469_s25 }
  0x19   : > { %p300_p7 = pneg %p299_p4  ;;  %p304_p10 = por %p303_p8, %p302_p5 }
  0x1b   : > { %p306_p0 = por %p305_p9, %p304_p10 }
  0x1d   : > { %p307_p1 = pnand %p306_p0, %p300_p7 }
  0x1f   : > { %310 = shalt.err (!%p307_p1)
}
  0x20   : > { %s311_s13 = scalar_lea.vmem %s477_s27, 128  ;;  %s394_s14 = smov [#allocation2]  }
  0x21   : > { %p312_p2 = scmp.ne.s32.totalorder %s477_s27, %s311_s13  ;;  %s316_s16 = sshll.u32 %s394_s14, 4  ;;  %s317_s16 = int_to_ptr.vmem [resolvable:$false] %s316_s16 }
  0x22   : > { %s318_s20 = scalar_lea.vmem %s317_s16, 256  ;;  %p319_p11 = scmp.lt.s32.totalorder %s477_s27, %s317_s16 }
  0x23   : > { %p314_p4 = pnand %p312_p2, %p298_p3  ;;  %p320_p5 = scmp.lt.s32.totalorder %s318_s20, %s311_s13 }
  0x25   : > { %p315_p12 = pneg %p314_p4  ;;  %p321_p8 = por %p320_p5, %p319_p11 }
  0x27   : > { %p322_p9 = pnand %p321_p8, %p315_p12 }
  0x29   : > { %325 = shalt.err (!%p322_p9)
}
  0x2a   : > { %253 = dma.hbm_to_vmem [thread:$0]  (!%p473_p13), %s469_s25, 128, %s477_s27, %s88_s29  }
  0x2b   : > { %p575_p0 = scmp.lt.s32.totalorder %s392_s9, 3  ;;  %p576_p1 = scmp.ge.s32.totalorder %s392_s9, 1 }
  0x2d   : > { %p104_p3 = pnand %p576_p1, %p575_p0 }
  0x2e   : > { %s511_s21 = sand.u32 (!%p104_p3), 1, %s384_s7  }
  0x2f   : > { %107 = sbr.rel (%p104_p3) target bundleno = 106 (0x6a), region = 24  ;;  %s240_s22 = sshll.u32 (!%p104_p3), %s511_s21, 3 }
  0x30   : > { %s110_s23 = scalar_lea.sflag (!%p104_p3), [#allocation3], %s511_s21  ;;  %s113_s24 = scalar_lea.vmem (!%p104_p3), [#allocation2], %s240_s22 }
  0x36   : > { %371 = dma.done.wait (%p449_p6), %s110_s23, 128  }
  0x37   : > { %373 = vsyncadd (%p449_p6), %s110_s23, 4294967168  ;;  %v132_v0 = vld [vmem:[%s113_s24] sm:$0xff]  ;;  %s131_s17 = scalar_lea.vmem [#allocation5], %s240_s22  ;;  %s243_s26 = sshll.u32 %s427_s10, 7 }
  0x38   : > { %v133_v1 = vadd.f32 0.5254587, %v132_v0  ;;  %s164_s25 = sshll.u32 %s131_s17, 4  ;;  %s525_s29 = scalar_lea.hbm %s568_s1, %s243_s26  ;;  %s520_s25 = int_to_ptr.vmem [resolvable:$true] %s164_s25 }
  0x39   : > { %s151_s30 = scalar_lea.sflag [#allocation4], %s511_s21  ;;  %s326_s2 = scalar_lea.vmem %s520_s25, 128 }
  0x3a   : > { %v134_v2 = vmin.f32 %v133_v1, 20.0  ;;  %vm135_vm1 = vcmp.gt.f32.partialorder %v133_v1, 20.0  ;;  %p327_p6 = scmp.ne.s32.totalorder %s520_s25, %s326_s2  ;;  %p577_p11 = scmp.ne.s32.totalorder %s572_s18, 0 }
  0x3b   : > { %s395_s10 = smov [#allocation5]  }
  0x3c   : > { %v136_v3 = vmul.f32 1.442695, %v134_v2  ;;  %p328_p12 = pnand %p327_p6, %p577_p11  ;;  %s330_s3 = sshll.u32 %s395_s10, 4  ;;  %s331_s3 = int_to_ptr.vmem [resolvable:$false] %s330_s3 }
  0x3d   : > { %s332_s4 = scalar_lea.vmem %s331_s3, 256  ;;  %p333_p7 = scmp.lt.s32.totalorder %s520_s25, %s331_s3 }
  0x3e   : > { %292 = vpow2.f32 %v136_v3  ;;  %p329_p13 = pneg %p328_p12  ;;  %p334_p10 = scmp.lt.s32.totalorder %s332_s4, %s326_s2 }
  0x40   : > { %p335_p2 = por %p334_p10, %p333_p7 }
  0x42   : > { %p336_p4 = pnand %p335_p2, %p329_p13 }
  0x48   : > { %v293_v4 = vpop.eup %292 }
  0x49   : > { %v138_v5 = vadd.f32 1.0, %v293_v4  ;;  %v141_v6 = vmul.f32 -0.5, %v293_v4  ;;  %v144_v8 = vand.u32 2147483647, %v293_v4 }
  0x4b   : > { %294 = vlog2.f32 %v138_v5  ;;  %v142_v7 = vadd.f32 1.0, %v141_v6  ;;  %vm145_vm0 = vcmp.lt.f32.partialorder %v144_v8, 0.0004427343 }
  0x4d   : > { %v143_v9 = vmul.f32 %v293_v4, %v142_v7 }
  0x55   : > { %v295_v10 = vpop.eup %294 }
  0x56   : > { %v140_v11 = vmul.f32 0.6931472, %v295_v10 }
  0x58   : > { %v146_v12 = vsel %vm145_vm0, %v143_v9, %v140_v11 }
  0x59   : > { %v147_v13 = vsel %vm135_vm1, %v133_v1, %v146_v12 }
  0x5a   : > { %v148_v14 = vadd.f32 0.01, %v147_v13 }
  0x5c   : > { %149 = vst [vmem:[%s131_s17] sm:$0xff] %v148_v14 }
  0x5d   : > { %339 = shalt.err (!%p336_p4)
}
  0x5e   : > { %s340_s5 = scalar_lea.hbm %s525_s29, 128  ;;  %s344_s14 = scalar_lea.hbm %s568_s1, 256 }
  0x5f   : > { %p341_p5 = scmp.ne.s32.totalorder %s525_s29, %s340_s5  ;;  %p345_p0 = scmp.lt.u32.totalorder %s525_s29, %s568_s1 }
  0x60   : > { %p346_p1 = scmp.lt.u32.totalorder %s344_s14, %s340_s5  ;;  %p348_p6 = scmp.lt.u32.totalorder %s340_s5, %s525_s29 }
  0x61   : > { %p342_p8 = pnand %p341_p5, %p577_p11 }
  0x62   : > { %p347_p3 = por %p346_p1, %p345_p0 }
  0x63   : > { %p343_p9 = pneg %p342_p8 }
  0x64   : > { %p349_p12 = por %p348_p6, %p347_p3 }
  0x66   : > { %p350_p13 = pnand %p349_p12, %p343_p9 }
  0x68   : > { %353 = shalt.err (!%p350_p13)
}
  0x69   : > { %248 = dma.vmem_to_hbm [thread:$0]  (%p577_p11), %s520_s25, 128, %s525_s29, %s151_s30  }
  0x6a PF: > { %s176_s21 = sand.u32 1, %s380_s6   ;;  %p578_p7 = scmp.ne.s32.totalorder %s573_s19, 0 }
  0x6b   : > { %p579_p10 = scmp.ge.s32.totalorder %s392_s9, 2  ;;  %s177_s22 = scalar_lea.sflag [#allocation4], %s176_s21 }
  0x6d   : > { %p255_p2 = pnand %p579_p10, %p578_p7 }
  0x6f   : > { %375 = dma.done.wait (!%p255_p2), %s177_s22, 128  }
  0x70   : > { %377 = vsyncadd (!%p255_p2), %s177_s22, 4294967168  ;;  %p14_p4 = scmp.ge.s32.totalorder %s431_s12, 4   ;;  %s580_s6 = smov %s384_s7 }
  0x71   : > { %s581_s7 = smov %s388_s8  ;;  %s582_s8 = smov %s443_s15 }
  0x72   : > { %s583_s9 = smov %s431_s12  ;;  %16 = sbr.rel (!%p14_p4) target bundleno = 5 (0x5), region = 69 }
  0x79   :  { %182 = vsyncpa [#allocation3], 1 }
  0x7a   :  { %184 = vsyncpa [#allocation3 + $0x1], 1 }
  0x7b   :  { %185 = vsyncpa [#allocation4], 1 }
  0x7c   :  { %187 = vsyncpa [#allocation4 + $0x1], 1 }

</bundles_post_ra>
